<compile_context>
chip_gen: v6e
topology: v6e:2x2x1
jax: 0.10.0
libtpu: 0.0.40
codegen_flags: <defaults>
</compile_context>

<pallas_src>
import jax
import jax.numpy as jnp
from jax.experimental import pallas as pl
from jax.experimental.pallas import tpu as pltpu


def td3_actor_kernel(x_ref, w1_ref, b1_ref, w2_ref, b2_ref, w3_ref, b3_ref,
                     amin_ref, amax_ref, out_ref):
    # Layer 1: Linear + ReLU
    h = jnp.dot(x_ref[...], w1_ref[...],
                preferred_element_type=jnp.float32) + b1_ref[...]
    h = jnp.maximum(h, 0.0)
    # Layer 2: Linear + ReLU
    h = jnp.dot(h, w2_ref[...],
                preferred_element_type=jnp.float32) + b2_ref[...]
    h = jnp.maximum(h, 0.0)
    # Output layer: Linear (actor head, no activation)
    mu = jnp.dot(h, w3_ref[...],
                 preferred_element_type=jnp.float32) + b3_ref[...]
    # TD3 head: action = action_max * tanh(mu); clamp min-then-max like torch.
    amax = amax_ref[...]
    amin = amin_ref[...]
    act = amax * jnp.tanh(mu)
    act = jnp.minimum(act, amax)
    act = jnp.maximum(act, amin)
    out_ref[...] = act.astype(out_ref.dtype)


def td3_actor_forward(state, params, action_min, action_max, *, block_b=512):
    """Deterministic TD3_Actor.forward (deterministic=True path).

    state:       (B, state_dim) float32
    params:      dict with w1 (S,H1), b1 (1,H1), w2 (H1,H2), b2 (1,H2),
                 w3 (H2,A), b3 (1,A)
    action_min:  (1, A) float32
    action_max:  (1, A) float32
    returns:     (B, A) float32 action
    """
    B, S = state.shape
    H1 = params["w1"].shape[1]
    H2 = params["w2"].shape[1]
    A = params["w3"].shape[1]

    # Choose the batch tile. Small batches: a single full block (no grid
    # overhead). Large batches: tile at block_b rows so the state/output
    # tiles pipeline through VMEM while the (tiny) weights stay resident.
    if B <= block_b:
        tb = B
        b_pad = B
    else:
        tb = block_b
        b_pad = -(-B // tb) * tb
        if b_pad != B:
            state = jnp.pad(state, ((0, b_pad - B), (0, 0)))
    num_blocks = b_pad // tb

    x_in = state

    # Explicit specs (no loop-variable closure): state/output tiled on batch,
    # weights/biases/bounds full-block with constant index_map -> resident.
    in_specs = [
        pl.BlockSpec((tb, S), lambda i: (i, 0), memory_space=pltpu.VMEM),
        pl.BlockSpec((S, H1), lambda i: (0, 0), memory_space=pltpu.VMEM),
        pl.BlockSpec((1, H1), lambda i: (0, 0), memory_space=pltpu.VMEM),
        pl.BlockSpec((H1, H2), lambda i: (0, 0), memory_space=pltpu.VMEM),
        pl.BlockSpec((1, H2), lambda i: (0, 0), memory_space=pltpu.VMEM),
        pl.BlockSpec((H2, A), lambda i: (0, 0), memory_space=pltpu.VMEM),
        pl.BlockSpec((1, A), lambda i: (0, 0), memory_space=pltpu.VMEM),
        pl.BlockSpec((1, A), lambda i: (0, 0), memory_space=pltpu.VMEM),
        pl.BlockSpec((1, A), lambda i: (0, 0), memory_space=pltpu.VMEM),
    ]
    out_spec = pl.BlockSpec((tb, A), lambda i: (i, 0), memory_space=pltpu.VMEM)

    weight_bytes = 4 * (S * H1 + H1 + H1 * H2 + H2 + H2 * A + A + 2 * A)
    cost = pl.CostEstimate(
        flops=2 * b_pad * (S * H1 + H1 * H2 + H2 * A),
        transcendentals=b_pad * A,
        bytes_accessed=4 * b_pad * (S + A) + weight_bytes,
    )

    out = pl.pallas_call(
        td3_actor_kernel,
        out_shape=jax.ShapeDtypeStruct((b_pad, A), jnp.float32),
        grid=(num_blocks,),
        in_specs=in_specs,
        out_specs=out_spec,
        compiler_params=pltpu.CompilerParams(
            dimension_semantics=("parallel",)),
        cost_estimate=cost,
    )(x_in, params["w1"], params["b1"], params["w2"], params["b2"],
      params["w3"], params["b3"], action_min, action_max)

    if b_pad != B:
        out = out[:B]
    # NOTE: output last-dim A=4 is lane-sparse (4/128 lanes per store); only
    # matters at very large B — pad A to 128 downstream if it becomes hot.
    return out


def init_params(key, state_dim, hidden_dim, action_dim):
    """Deterministic synthetic init (shapes follow the torch MLP)."""
    dims = [state_dim] + list(hidden_dim) + [action_dim]
    params = {}
    keys = jax.random.split(key, len(dims) - 1)
    for i, (din, dout) in enumerate(zip(dims[:-1], dims[1:]), start=1):
        bound = 1.0 / jnp.sqrt(jnp.float32(din))
        params[f"w{i}"] = jax.random.uniform(
            keys[i - 1], (din, dout), jnp.float32, -bound, bound)
        params[f"b{i}"] = jnp.zeros((1, dout), jnp.float32)
    return params


def _reference(state, params, action_min, action_max):
    h = jnp.maximum(state @ params["w1"] + params["b1"], 0.0)
    h = jnp.maximum(h @ params["w2"] + params["b2"], 0.0)
    mu = h @ params["w3"] + params["b3"]
    act = action_max * jnp.tanh(mu)
    act = jnp.minimum(act, action_max)
    act = jnp.maximum(act, action_min)
    return act


if __name__ == "__main__":
    # Shapes consistent with the module: flat state, 2 hidden layers.
    state_dim = 16
    hidden_dim = [32, 32]
    action_dim = 4

    key = jax.random.PRNGKey(0)
    k_state, k_params = jax.random.split(key)
    params = init_params(k_params, state_dim, hidden_dim, action_dim)

    action_max = jnp.full((1, action_dim), 2.0, jnp.float32)
    action_min = -action_max

    # TODO(synk): non-deterministic branch (Gaussian exploration noise) is not
    # implemented; forward here matches deterministic=True exactly.

    ok = True

    # 1) Small batch: single full-batch block (no grid overhead).
    state_small = jax.random.normal(k_state, (8, state_dim), jnp.float32)
    act_small = td3_actor_forward(state_small, params, action_min, action_max)
    jax.block_until_ready(act_small)
    ref_small = _reference(state_small, params, action_min, action_max)
    ok &= bool(jnp.allclose(act_small, ref_small, atol=1e-5, rtol=1e-5))

    # 2) Larger batch: exercises the tiled batch grid (2 parallel steps).
    state_big = jax.random.normal(k_state, (256, state_dim), jnp.float32)
    act_big = td3_actor_forward(state_big, params, action_min, action_max,
                                block_b=128)
    jax.block_until_ready(act_big)
    ref_big = _reference(state_big, params, action_min, action_max)
    ok &= bool(jnp.allclose(act_big, ref_big, atol=1e-5, rtol=1e-5))

    assert ok
    print("KERNEL_OK")
</pallas_src>

<mosaic_0001>
module attributes {stable_mosaic.version = 11 : i64} {
  func.func @td3_actor_kernel(%arg0: i32, %arg1: memref<8x16xf32, #tpu.memory_space<vmem>>, %arg2: memref<16x32xf32, #tpu.memory_space<vmem>>, %arg3: memref<1x32xf32, #tpu.memory_space<vmem>>, %arg4: memref<32x32xf32, #tpu.memory_space<vmem>>, %arg5: memref<1x32xf32, #tpu.memory_space<vmem>>, %arg6: memref<32x4xf32, #tpu.memory_space<vmem>>, %arg7: memref<1x4xf32, #tpu.memory_space<vmem>>, %arg8: memref<1x4xf32, #tpu.memory_space<vmem>>, %arg9: memref<1x4xf32, #tpu.memory_space<vmem>>, %arg10: memref<8x4xf32, #tpu.memory_space<vmem>>) attributes {dimension_semantics = [#tpu.dimension_semantics<parallel>], iteration_bounds = array<i64: 1>, scalar_prefetch = 0 : i64, scratch_operands = 0 : i64, tpu.core_type = #tpu.core_type<tc>, window_params = [{transform_indices = @transform_0, window_bounds = array<i64: 8, 16>}, {pipeline_mode = #tpu.pipeline_mode<synchronous>, transform_indices = @transform_1, window_bounds = array<i64: 16, 32>}, {pipeline_mode = #tpu.pipeline_mode<synchronous>, transform_indices = @transform_2, window_bounds = array<i64: 1, 32>}, {pipeline_mode = #tpu.pipeline_mode<synchronous>, transform_indices = @transform_3, window_bounds = array<i64: 32, 32>}, {pipeline_mode = #tpu.pipeline_mode<synchronous>, transform_indices = @transform_4, window_bounds = array<i64: 1, 32>}, {pipeline_mode = #tpu.pipeline_mode<synchronous>, transform_indices = @transform_5, window_bounds = array<i64: 32, 4>}, {pipeline_mode = #tpu.pipeline_mode<synchronous>, transform_indices = @transform_6, window_bounds = array<i64: 1, 4>}, {pipeline_mode = #tpu.pipeline_mode<synchronous>, transform_indices = @transform_7, window_bounds = array<i64: 1, 4>}, {pipeline_mode = #tpu.pipeline_mode<synchronous>, transform_indices = @transform_8, window_bounds = array<i64: 1, 4>}, {transform_indices = @transform_9, window_bounds = array<i64: 8, 4>}]} {
    %c0 = arith.constant 0 : index
    %c0_0 = arith.constant 0 : index
    %0 = vector.load %arg1[%c0, %c0_0] : memref<8x16xf32, #tpu.memory_space<vmem>>, vector<8x16xf32>
    %c0_1 = arith.constant 0 : index
    %c0_2 = arith.constant 0 : index
    %1 = vector.load %arg2[%c0_1, %c0_2] : memref<16x32xf32, #tpu.memory_space<vmem>>, vector<16x32xf32>
    %cst = arith.constant dense<0.000000e+00> : vector<8x32xf32>
    %2 = tpu.matmul %0, %1, %cst {dimension_numbers = #tpu.dot_dimension_numbers<[1], [0], [0], [1], [0, 0, 1, 1], [], []>} : vector<8x16xf32>, vector<16x32xf32>, vector<8x32xf32> -> vector<8x32xf32>
    %c0_3 = arith.constant 0 : index
    %c0_4 = arith.constant 0 : index
    %3 = vector.load %arg3[%c0_3, %c0_4] : memref<1x32xf32, #tpu.memory_space<vmem>>, vector<1x32xf32>
    %4 = vector.broadcast %3 : vector<1x32xf32> to vector<8x32xf32>
    %5 = arith.addf %2, %4 : vector<8x32xf32>
    %cst_5 = arith.constant 0.000000e+00 : f32
    %6 = vector.broadcast %cst_5 : f32 to vector<8x32xf32>
    %7 = arith.maximumf %5, %6 : vector<8x32xf32>
    %c0_6 = arith.constant 0 : index
    %c0_7 = arith.constant 0 : index
    %8 = vector.load %arg4[%c0_6, %c0_7] : memref<32x32xf32, #tpu.memory_space<vmem>>, vector<32x32xf32>
    %cst_8 = arith.constant dense<0.000000e+00> : vector<8x32xf32>
    %9 = tpu.matmul %7, %8, %cst_8 {dimension_numbers = #tpu.dot_dimension_numbers<[1], [0], [0], [1], [0, 0, 1, 1], [], []>} : vector<8x32xf32>, vector<32x32xf32>, vector<8x32xf32> -> vector<8x32xf32>
    %c0_9 = arith.constant 0 : index
    %c0_10 = arith.constant 0 : index
    %10 = vector.load %arg5[%c0_9, %c0_10] : memref<1x32xf32, #tpu.memory_space<vmem>>, vector<1x32xf32>
    %11 = vector.broadcast %10 : vector<1x32xf32> to vector<8x32xf32>
    %12 = arith.addf %9, %11 : vector<8x32xf32>
    %cst_11 = arith.constant 0.000000e+00 : f32
    %13 = vector.broadcast %cst_11 : f32 to vector<8x32xf32>
    %14 = arith.maximumf %12, %13 : vector<8x32xf32>
    %c0_12 = arith.constant 0 : index
    %c0_13 = arith.constant 0 : index
    %15 = vector.load %arg6[%c0_12, %c0_13] : memref<32x4xf32, #tpu.memory_space<vmem>>, vector<32x4xf32>
    %cst_14 = arith.constant dense<0.000000e+00> : vector<8x4xf32>
    %16 = tpu.matmul %14, %15, %cst_14 {dimension_numbers = #tpu.dot_dimension_numbers<[1], [0], [0], [1], [0, 0, 1, 1], [], []>} : vector<8x32xf32>, vector<32x4xf32>, vector<8x4xf32> -> vector<8x4xf32>
    %c0_15 = arith.constant 0 : index
    %c0_16 = arith.constant 0 : index
    %17 = vector.load %arg7[%c0_15, %c0_16] : memref<1x4xf32, #tpu.memory_space<vmem>>, vector<1x4xf32>
    %18 = vector.broadcast %17 : vector<1x4xf32> to vector<8x4xf32>
    %19 = arith.addf %16, %18 : vector<8x4xf32>
    %c0_17 = arith.constant 0 : index
    %c0_18 = arith.constant 0 : index
    %20 = vector.load %arg9[%c0_17, %c0_18] : memref<1x4xf32, #tpu.memory_space<vmem>>, vector<1x4xf32>
    %c0_19 = arith.constant 0 : index
    %c0_20 = arith.constant 0 : index
    %21 = vector.load %arg8[%c0_19, %c0_20] : memref<1x4xf32, #tpu.memory_space<vmem>>, vector<1x4xf32>
    %22 = math.tanh %19 : vector<8x4xf32>
    %23 = vector.broadcast %20 : vector<1x4xf32> to vector<8x4xf32>
    %24 = arith.mulf %23, %22 : vector<8x4xf32>
    %25 = vector.broadcast %20 : vector<1x4xf32> to vector<8x4xf32>
    %26 = arith.minimumf %24, %25 : vector<8x4xf32>
    %27 = vector.broadcast %21 : vector<1x4xf32> to vector<8x4xf32>
    %28 = arith.maximumf %26, %27 : vector<8x4xf32>
    %c0_21 = arith.constant 0 : index
    %c0_22 = arith.constant 0 : index
    %29 = vector.load %arg10[%c0_21, %c0_22] : memref<8x4xf32, #tpu.memory_space<vmem>>, vector<8x4xf32>
    tpu.vector_store %arg10[%c0_21, %c0_22], %28 {strides = array<i32>} : memref<8x4xf32, #tpu.memory_space<vmem>>, vector<8x4xf32>,
    return
  }
  func.func @transform_0(%arg0: i32) -> (i32, i32) {
    %c0_i32 = arith.constant 0 : i32
    %c0_i32_0 = arith.constant 0 : i32
    return %arg0, %c0_i32 : i32, i32
  }
  func.func @transform_1(%arg0: i32) -> (i32, i32) {
    %c0_i32 = arith.constant 0 : i32
    %c0_i32_0 = arith.constant 0 : i32
    %c0_i32_1 = arith.constant 0 : i32
    return %c0_i32, %c0_i32_0 : i32, i32
  }
  func.func @transform_2(%arg0: i32) -> (i32, i32) {
    %c0_i32 = arith.constant 0 : i32
    %c0_i32_0 = arith.constant 0 : i32
    %c0_i32_1 = arith.constant 0 : i32
    return %c0_i32, %c0_i32_0 : i32, i32
  }
  func.func @transform_3(%arg0: i32) -> (i32, i32) {
    %c0_i32 = arith.constant 0 : i32
    %c0_i32_0 = arith.constant 0 : i32
    %c0_i32_1 = arith.constant 0 : i32
    return %c0_i32, %c0_i32_0 : i32, i32
  }
  func.func @transform_4(%arg0: i32) -> (i32, i32) {
    %c0_i32 = arith.constant 0 : i32
    %c0_i32_0 = arith.constant 0 : i32
    %c0_i32_1 = arith.constant 0 : i32
    return %c0_i32, %c0_i32_0 : i32, i32
  }
  func.func @transform_5(%arg0: i32) -> (i32, i32) {
    %c0_i32 = arith.constant 0 : i32
    %c0_i32_0 = arith.constant 0 : i32
    %c0_i32_1 = arith.constant 0 : i32
    return %c0_i32, %c0_i32_0 : i32, i32
  }
  func.func @transform_6(%arg0: i32) -> (i32, i32) {
    %c0_i32 = arith.constant 0 : i32
    %c0_i32_0 = arith.constant 0 : i32
    %c0_i32_1 = arith.constant 0 : i32
    return %c0_i32, %c0_i32_0 : i32, i32
  }
  func.func @transform_7(%arg0: i32) -> (i32, i32) {
    %c0_i32 = arith.constant 0 : i32
    %c0_i32_0 = arith.constant 0 : i32
    %c0_i32_1 = arith.constant 0 : i32
    return %c0_i32, %c0_i32_0 : i32, i32
  }
  func.func @transform_8(%arg0: i32) -> (i32, i32) {
    %c0_i32 = arith.constant 0 : i32
    %c0_i32_0 = arith.constant 0 : i32
    %c0_i32_1 = arith.constant 0 : i32
    return %c0_i32, %c0_i32_0 : i32, i32
  }
  func.func @transform_9(%arg0: i32) -> (i32, i32) {
    %c0_i32 = arith.constant 0 : i32
    %c0_i32_0 = arith.constant 0 : i32
    return %arg0, %c0_i32 : i32, i32
  }
}

</mosaic_0001>

<bundles_post_ra>
// kernel: tpu_custom_call.1
= control target key start
LH: loop header
LB: loop body
LE: loop exit
PB: predicated region body
PF: predicated region fallthrough
CT: control target
= control target key end

     0   :  { %14 = vsyncpa [#allocation3], 0  ;;  %s550_s0 = inlined_call_operand.vmem [shape: f32[8,16], index: 0, kind: input, shape index: {}]   ;;  %s551_s1 = inlined_call_operand.hbm [shape: f32[16,32], index: 1, kind: input, shape index: {}]   ;;  %s552_s2 = inlined_call_operand.vmem [shape: f32[1,32], index: 2, kind: input, shape index: {}]   ;;  %s553_s3 = inlined_call_operand.vmem [shape: f32[32,32], index: 3, kind: input, shape index: {}]   ;;  %s554_s4 = inlined_call_operand.hbm [shape: f32[1,32], index: 4, kind: input, shape index: {}]   ;;  %s555_s5 = inlined_call_operand.vmem [shape: f32[32,4], index: 5, kind: input, shape index: {}]   ;;  %s556_s6 = inlined_call_operand.vmem [shape: f32[1,4], index: 6, kind: input, shape index: {}]   ;;  %s557_s7 = inlined_call_operand.vmem [shape: f32[1,4], index: 7, kind: input, shape index: {}]   ;;  %s558_s8 = inlined_call_operand.vmem [shape: f32[1,4], index: 8, kind: input, shape index: {}]   ;;  %s559_s9 = inlined_call_operand.vmem [shape: f32[8,4], index: 9, kind: output, shape index: {}]  }
   0x1   :  { %15 = vsyncpa [#allocation5], 0  ;;  %s441_s30 = smov [#allocation2]  }
   0x2   :  { %s23_s10 = sshll.u32 %s441_s30, 4  ;;  %s24_s10 = int_to_ptr.vmem [resolvable:$true] %s23_s10 }
   0x3   :  { %s405_s11 = scalar_lea.vmem %s24_s10, 256  ;;  %p410_p1 = scmp.lt.s32.totalorder %s24_s10, %s24_s10 }
   0x4   :  { %p406_p0 = scmp.ne.s32.totalorder %s24_s10, %s405_s11  ;;  %p411_p2 = scmp.lt.s32.totalorder %s405_s11, %s405_s11 }
   0x6   :  { %p412_p3 = por %p411_p2, %p410_p1 }
   0x8   :  { %p413_p4 = pnand %p412_p3, %p406_p0 }
   0xa   :  { %416 = shalt.err (!%p413_p4)
}
   0xb   :  { %s442_s12 = smov 128   ;;  %s443_s13 = smov 8  }
   0xc   :  { %29 = dma.hbm_to_vmem [thread:$0]  %s551_s1, 256, %s24_s10, [#allocation3], %s442_s12, %s442_s12, %s443_s13  }
   0xd   :  { %s444_s16 = smov [#allocation4]  }
   0xe   :  { %s40_s17 = sshll.u32 %s444_s16, 4  ;;  %s41_s17 = int_to_ptr.vmem [resolvable:$true] %s40_s17 }
   0xf   :  { %s425_s18 = scalar_lea.vmem %s41_s17, 16  ;;  %s429_s19 = scalar_lea.vmem %s41_s17, 32 }
  0x10   :  { %p426_p5 = scmp.ne.s32.totalorder %s41_s17, %s425_s18  ;;  %p430_p6 = scmp.lt.s32.totalorder %s41_s17, %s41_s17 }
  0x11   :  { %p431_p7 = scmp.lt.s32.totalorder %s429_s19, %s425_s18 }
  0x13   :  { %p432_p8 = por %p431_p7, %p430_p6 }
  0x15   :  { %p433_p9 = pnand %p432_p8, %p426_p5 }
  0x17   :  { %436 = shalt.err (!%p433_p9)
}
  0x18   :  { %43 = dma.hbm_to_vmem [thread:$0]  %s554_s4, 16, %s41_s17, [#allocation5]  }
  0x19   :  { %437 = dma.done.wait [#allocation3], 256  }
  0x1a   :  { %438 = vsyncadd [#allocation3], 4294967040 }
  0x1b   :  { %439 = dma.done.wait [#allocation5], 16  }
  0x1c   :  { %440 = vsyncadd [#allocation5], 4294967280  ;;  %v445_v0 = vmov 0.0   ;;  %vm446_vm0 = vmmov 0   ;;  %v60_v1 = vld [vmem:[#allocation2 + $0x8] sm:$0xff]  ;;  %v59_v2 = vld [vmem:[#allocation2] sm:$0xff] }
  0x1d   :  { %360 = vmatprep.subr.mxu0 %v445_v0  ;;  %364 = vmatprep.mubr.msk.f32.mxu0 %vm446_vm0, %v445_v0  ;;  %v58_v3 = vld [vmem:[%s550_s0] sm:$0xff]  ;;  %vm68_vm1 = vcmask 130048   ;;  %v146_v4 = vld [vmem:[%s553_s3 + $0x18] sm:$0xff]  ;;  %v145_v5 = vld [vmem:[%s553_s3 + $0x10] sm:$0xff]  ;;  %vm154_vm2 = vcmask 261120   ;;  %vm331_vm3 = vcmask 31744  }
  0x1e   :  { %367 = vmatprep.subr.mxu1 %v445_v0  ;;  %375 = vmatprep.mubr.msk.f32.mxu1 %vm446_vm0, %v445_v0  ;;  %v144_v6 = vld [vmem:[%s553_s3 + $0x8] sm:$0xff]  ;;  %v143_v7 = vld [vmem:[%s553_s3] sm:$0xff]  ;;  %v232_v8 = vld [vmem:[%s555_s5 + $0x18] sm:$0xff] }
  0x1f   :  { %361 = vmatpush3.msra.mxu0 %v60_v1  ;;  %368 = vmatpush3.msra.mxu1 %v146_v4  ;;  %v339_v9 = vld [vmem:[%s552_s2] ss:$0 sm:$0xff]  ;;  %v231_v14 = vld [vmem:[%s555_s5 + $0x10] sm:$0xff]  ;;  %v230_v15 = vld [vmem:[%s555_s5 + $0x8] sm:$0xff] }
  0x20   :  { %362 = vmatprep.subr.mxu0 %v445_v0  ;;  %369 = vmatprep.subr.mxu1 %v445_v0  ;;  %v229_v16 = vld [vmem:[%s555_s5] sm:$0xff]  ;;  %v341_v17 = vld [vmem:[#allocation4] ss:$0 sm:$0xff] }
  0x21   :  { %363 = vmatpush3.msra.mxu0 %v59_v2  ;;  %370 = vmatpush3.msra.mxu1 %v145_v5  ;;  %v343_v22 = vld [vmem:[%s556_s6] ss:$0 sm:$0xff] }
  0x22   :  { %365 = vmatmul.mubr.msk.f32.vlgmr.msra.gmra.mxu0 %vm68_vm1, %v58_v3  ;;  %378 = vmatprep.subr.mxu0 %v445_v0  ;;  %v345_v26 = vld [vmem:[%s558_s8] ss:$0 sm:$0xff] }
  0x23   :  { %386 = vmatprep.mubr.msk.f32.mxu0 %vm446_vm0, %v445_v0  ;;  %371 = vmatprep.subr.mxu1 %v445_v0  ;;  %v346_v29 = vld [vmem:[%s557_s7] ss:$0 sm:$0xff] }
  0x24   :  { %372 = vmatpush3.msra.mxu1 %v144_v6  ;;  %379 = vmatpush3.msra.mxu0 %v232_v8 }
  0x25   :  { %373 = vmatprep.subr.mxu1 %v445_v0  ;;  %380 = vmatprep.subr.mxu0 %v445_v0 }
  0x26   :  { %374 = vmatpush3.msra.mxu1 %v143_v7  ;;  %381 = vmatpush3.msra.mxu0 %v231_v14 }
  0x27   :  { %382 = vmatprep.subr.mxu0 %v445_v0 }
  0x28   :  { %383 = vmatpush3.msra.mxu0 %v230_v15 }
  0x29   :  { %384 = vmatprep.subr.mxu0 %v445_v0 }
  0x2a   :  { %385 = vmatpush3.msra.mxu0 %v229_v16 }
  0xe2   :  { %v138_v10 = vpop.f32.mrf.mxu0 }
  0xe3   :  { %v139_v11 = vadd.f32 %v339_v9, %v138_v10 }
  0xe4   :  { %v366_v12 = vpop.f32.mrf.mxu0 }
  0xe5   :  { %v142_v13 = vmax.f32 %v139_v11, 0.0 }
  0xe7   :  { %376 = vmatmul.mubr.msk.f32.vlgmr.msra.gmra.mxu1 %vm154_vm2, %v142_v13 }
 0x1a7   :  { %v224_v18 = vpop.f32.mrf.mxu1 }
 0x1a8   :  { %v225_v19 = vadd.f32 %v341_v17, %v224_v18 }
 0x1a9   :  { %v377_v20 = vpop.f32.mrf.mxu1 }
 0x1aa   :  { %v228_v21 = vmax.f32 %v225_v19, 0.0 }
 0x1ac   :  { %387 = vmatmul.mubr.msk.f32.vlgmr.msra.gmra.mxu0 %vm154_vm2, %v228_v21 }
 0x26c   :  { %v309_v23 = vpop.f32.mrf.mxu0 }
 0x26d   :  { %v310_v24 = vadd.f32 %v343_v22, %v309_v23 }
 0x26e   :  { %v388_v25 = vpop.f32.mrf.mxu0 }
 0x26f   :  { %395 = vtanh.f32 %v310_v24 }
 0x27c   :  { %v396_v27 = vpop.eup %395 }
 0x27d   :  { %v322_v28 = vmul.f32 %v396_v27, %v345_v26 }
 0x27f   :  { %v323_v30 = vmin.f32 %v322_v28, %v345_v26 }
 0x281   :  { %v330_v31 = vmax.f32 %v323_v30, %v346_v29 }
 0x283   :  { %332 = vst.msk [vmem:[%s559_s9] sm:$0xff] %vm331_vm3, %v330_v31 }
 0x284   :  { %337 = vsyncpa [#allocation3], 1 }
 0x285   :  { %338 = vsyncpa [#allocation5], 1 }

</bundles_post_ra>
